<compile_context>
chip_gen: v7x
topology: tpu7x:2x2x1
jax: 0.10.0
libtpu: 0.0.40
codegen_flags: <defaults>
</compile_context>

<pallas_src>
import jax
import jax.numpy as jnp
from jax.experimental import pallas as pl
from jax.experimental.pallas import tpu as pltpu


# -----------------------------------------------------------------------------
# Tiling helpers
# -----------------------------------------------------------------------------
def _row_tile(m, target=512):
    """Largest row tile <= target that divides m and is a multiple of 8."""
    if m <= target:
        return m
    for tm in range(target, 7, -8):
        if m % tm == 0:
            return tm
    return m


def _batch_tile(b, target=8):
    """Batch tile so the leading parallel axis can feed both v7x TensorCores."""
    if b > target and b % target == 0:
        return target
    return b


# -----------------------------------------------------------------------------
# Kernel 1: Encoder 1x1 conv (matmul over flattened pixels) fused with the
# loop-invariant attention projection enc_att = enc @ W_enc + (b_enc + b_dec).
# -----------------------------------------------------------------------------
def encoder_kernel(x_ref, wc_ref, bc_ref, wa_ref, ba_ref, enc_ref, enc_att_ref):
    # 1x1 conv == matmul (bf16 operands, f32 accumulation).
    enc = (
        jnp.dot(x_ref[...], wc_ref[...], preferred_element_type=jnp.float32)
        + bc_ref[...]
    )                                                          # [tm, E] f32
    enc_ref[...] = enc.astype(enc_ref.dtype)
    # Hoisted attention projection (would otherwise be recomputed every step).
    enc_att_ref[...] = (
        jnp.dot(enc.astype(jnp.bfloat16), wa_ref[...],
                preferred_element_type=jnp.float32)
        + ba_ref[...]
    ).astype(enc_att_ref.dtype)


def encoder_forward(x2d_bf16, w_conv, b_conv, w_att, b_att, *, row_target=512):
    M, Cin = x2d_bf16.shape
    E = w_conv.shape[1]
    A = w_att.shape[1]
    tm = _row_tile(M, row_target)
    # TODO(synk): at production sizes (Cin=2048) also tile the E/A lane axes and
    # the Cin reduction with an accumulator; whole-K is fine at these shapes.
    return pl.pallas_call(
        encoder_kernel,
        out_shape=(
            jax.ShapeDtypeStruct((M, E), jnp.bfloat16),   # encoder features
            jax.ShapeDtypeStruct((M, A), jnp.float32),    # precomputed enc_att
        ),
        grid_spec=pltpu.PrefetchScalarGridSpec(
            num_scalar_prefetch=0,
            grid=(M // tm,),
            in_specs=[
                pl.BlockSpec((tm, Cin), lambda i: (i, 0)),
                pl.BlockSpec((Cin, E), lambda i: (0, 0)),
                pl.BlockSpec((1, E), lambda i: (0, 0)),
                pl.BlockSpec((E, A), lambda i: (0, 0)),
                pl.BlockSpec((1, A), lambda i: (0, 0)),
            ],
            out_specs=(
                pl.BlockSpec((tm, E), lambda i: (i, 0)),
                pl.BlockSpec((tm, A), lambda i: (i, 0)),
            ),
        ),
        compiler_params=pltpu.CompilerParams(
            dimension_semantics=("parallel",),
            vmem_limit_bytes=48 * 1024 * 1024,
        ),
    )(x2d_bf16, w_conv, b_conv, w_att, b_att)


# -----------------------------------------------------------------------------
# Kernel 2: one decoder timestep (attention + LSTMCell + fc), grid=(B_blocks, T)
# h / c live in VMEM scratch and persist across the sequential T grid axis.
# -----------------------------------------------------------------------------
def decoder_step_kernel(
    enc_ref,       # [bt, P, E]  bf16   (same block for every t -> stays resident)
    enc_att_ref,   # [bt, P, A]  f32    (precomputed, loop-invariant)
    emb_ref,       # [1, bt, Em] bf16   (per-step slice)
    w_dec_ref,     # [D, A]      bf16
    w_full_ref,    # [1, A]      f32    (full_att weight as a row vector)
    w_lstm_ref,    # [Em+E+D,4D] bf16   (fused [W_ih_emb | W_ih_ctx | W_hh])
    b_lstm_ref,    # [1, 4D]     f32    (b_ih + b_hh)
    w_fc_ref,      # [D, V]      bf16
    b_fc_ref,      # [1, V]      f32
    out_ref,       # [1, bt, V]
    alpha_ref,     # [1, bt, P]
    h_scr,         # VMEM [bt, D] f32  carried hidden state
    c_scr,         # VMEM [bt, D] f32  carried cell state
    xh_scr,        # VMEM [bt, Em+E+D] f32  fused LSTM input staging row
):
    t = pl.program_id(1)

    @pl.when(t == 0)
    def _():
        # Reference DecoderWithAttention.init_hidden_state -> zeros.
        h_scr[...] = jnp.zeros_like(h_scr)
        c_scr[...] = jnp.zeros_like(c_scr)

    enc = enc_ref[...]                                   # [bt, P, E] bf16
    enc_att = enc_att_ref[...]                           # [bt, P, A] f32
    h = h_scr[...]                                       # [bt, D] f32
    c = c_scr[...]                                       # [bt, D] f32
    E = enc.shape[-1]
    D = h.shape[-1]
    Em = emb_ref.shape[-1]

    # ---- Attention ----------------------------------------------------------
    dec_att = jnp.dot(h.astype(jnp.bfloat16), w_dec_ref[...],
                      preferred_element_type=jnp.float32)          # [bt, A]
    act = jnp.maximum(enc_att + dec_att[:, None, :], 0.0)          # [bt, P, A]
    # full_att (Linear(A,1)): VPU multiply + lane reduction instead of an N=1
    # MXU matmul; the bias is a per-row constant under softmax and is dropped.
    att = jnp.sum(act * w_full_ref[...][None], axis=-1)            # [bt, P]

    att = att - jnp.max(att, axis=-1, keepdims=True)               # softmax dim=1
    att_exp = jnp.exp(att)
    alpha = att_exp / jnp.sum(att_exp, axis=-1, keepdims=True)     # [bt, P] f32

    # context = sum_p alpha[b,p] * enc[b,p,:]  as a batched MXU contraction
    # (avoids materializing a broadcast [bt, P, E] temporary).
    context = jnp.einsum(
        "bqp,bpe->bqe", alpha[:, None, :].astype(jnp.bfloat16), enc,
        preferred_element_type=jnp.float32)[:, 0, :]               # [bt, E] f32

    # ---- LSTMCell: single fused gate matmul ---------------------------------
    xh_scr[:, 0:Em] = emb_ref[0].astype(jnp.float32)
    xh_scr[:, Em:Em + E] = context
    xh_scr[:, Em + E:Em + E + D] = h
    gates = (
        jnp.dot(xh_scr[...].astype(jnp.bfloat16), w_lstm_ref[...],
                preferred_element_type=jnp.float32)
        + b_lstm_ref[...]
    )                                                              # [bt, 4D] i,f,g,o
    i_g = jax.nn.sigmoid(gates[:, 0 * D:1 * D])
    f_g = jax.nn.sigmoid(gates[:, 1 * D:2 * D])
    g_g = jnp.tanh(gates[:, 2 * D:3 * D])
    o_g = jax.nn.sigmoid(gates[:, 3 * D:4 * D])
    c_new = f_g * c + i_g * g_g
    h_new = o_g * jnp.tanh(c_new)
    h_scr[...] = h_new
    c_scr[...] = c_new

    # ---- fc  (Dropout(0.5) in eval/identity mode) ---------------------------
    logits = (
        jnp.dot(h_new.astype(jnp.bfloat16), w_fc_ref[...],
                preferred_element_type=jnp.float32)
        + b_fc_ref[...]
    )                                                              # [bt, V]
    out_ref[...] = logits[None].astype(out_ref.dtype)
    alpha_ref[...] = alpha[None].astype(alpha_ref.dtype)


def decoder_with_attention(enc_feat, enc_att, emb_seq, dp):
    """enc_feat [B,P,E] bf16, enc_att [B,P,A] f32, emb_seq [T,B,Em] bf16."""
    B, P, E = enc_feat.shape
    A = enc_att.shape[-1]
    T, _, Em = emb_seq.shape
    D = dp["w_dec"].shape[0]
    V = dp["w_fc"].shape[1]
    bt = _batch_tile(B)
    nb = B // bt

    def const2d(arr):
        r, c = arr.shape
        return pl.BlockSpec((r, c), lambda b, t: (0, 0))

    in_specs = [
        pl.BlockSpec((bt, P, E), lambda b, t: (b, 0, 0)),    # encoder features
        pl.BlockSpec((bt, P, A), lambda b, t: (b, 0, 0)),    # hoisted enc_att
        pl.BlockSpec((1, bt, Em), lambda b, t: (t, b, 0)),   # embedding slice
        const2d(dp["w_dec"]), const2d(dp["w_full"]),
        const2d(dp["w_lstm"]), const2d(dp["b_lstm"]),
        const2d(dp["w_fc"]), const2d(dp["b_fc"]),
    ]
    out_specs = (
        pl.BlockSpec((1, bt, V), lambda b, t: (t, b, 0)),
        pl.BlockSpec((1, bt, P), lambda b, t: (t, b, 0)),
    )

    grid_spec = pltpu.PrefetchScalarGridSpec(
        num_scalar_prefetch=0,
        grid=(nb, T),
        in_specs=in_specs,
        out_specs=out_specs,
        scratch_shapes=[
            pltpu.VMEM((bt, D), jnp.float32),            # h (carried over T)
            pltpu.VMEM((bt, D), jnp.float32),            # c (carried over T)
            pltpu.VMEM((bt, Em + E + D), jnp.float32),   # fused LSTM input row
        ],
    )

    # TODO(synk): for production vocab sizes add a "parallel" grid axis over V
    # (tile 512-1024) so w_fc / the output are tiled and fit v7x's 64 MiB VMEM.
    outs, alphas = pl.pallas_call(
        decoder_step_kernel,
        out_shape=(
            jax.ShapeDtypeStruct((T, B, V), jnp.float32),
            jax.ShapeDtypeStruct((T, B, P), jnp.float32),
        ),
        grid_spec=grid_spec,
        compiler_params=pltpu.CompilerParams(
            # Batch blocks are independent (megacore parallel); the T axis
            # carries h/c in scratch and must stay sequential.
            dimension_semantics=("parallel", "arbitrary"),
            vmem_limit_bytes=48 * 1024 * 1024,
        ),
    )(
        enc_feat, enc_att, emb_seq,
        dp["w_dec"], dp["w_full"], dp["w_lstm"], dp["b_lstm"],
        dp["w_fc"], dp["b_fc"],
    )
    return outs, alphas


# -----------------------------------------------------------------------------
# Parameter construction (shapes follow the nn.Module __init__)
# -----------------------------------------------------------------------------
def xavier_uniform(key, shape):
    fan_in, fan_out = shape
    limit = (6.0 / (fan_in + fan_out)) ** 0.5
    return jax.random.uniform(key, shape, jnp.float32, -limit, limit)


def make_params(key, *, cin, encoder_dim, embed_size, attention_dim,
                decoder_dim, vocab_size):
    ks = jax.random.split(key, 16)
    D4 = 4 * decoder_dim
    return {
        # Encoder.conv : Conv2d(cin, encoder_dim, kernel_size=1) in matmul form
        "w_conv": xavier_uniform(ks[0], (cin, encoder_dim)),
        "b_conv": jax.random.normal(ks[1], (1, encoder_dim), jnp.float32) * 0.01,
        # Attention
        "w_enc": xavier_uniform(ks[2], (encoder_dim, attention_dim)),
        "b_enc": jnp.zeros((1, attention_dim), jnp.float32),
        "w_dec": xavier_uniform(ks[3], (decoder_dim, attention_dim)),
        "b_dec": jnp.zeros((1, attention_dim), jnp.float32),
        "w_full": xavier_uniform(ks[4], (attention_dim, 1)),
        # Embedding
        "emb_table": jax.random.normal(ks[5], (vocab_size, embed_size),
                                       jnp.float32) * 0.1,
        # LSTMCell(embed+encoder -> decoder); W_ih rows ordered [embed | context],
        # gate order i, f, g, o (PyTorch convention).
        "w_ih_e": jax.random.normal(ks[6], (embed_size, D4), jnp.float32) * 0.1,
        "w_ih_c": jax.random.normal(ks[7], (encoder_dim, D4), jnp.float32) * 0.1,
        "b_ih": jax.random.normal(ks[8], (1, D4), jnp.float32) * 0.01,
        "w_hh": jax.random.normal(ks[9], (decoder_dim, D4), jnp.float32) * 0.1,
        "b_hh": jax.random.normal(ks[10], (1, D4), jnp.float32) * 0.01,
        # fc
        "w_fc": jax.random.normal(ks[11], (decoder_dim, vocab_size),
                                  jnp.float32) * 0.1,
        "b_fc": jnp.zeros((1, vocab_size), jnp.float32),
    }


# -----------------------------------------------------------------------------
# Full forward (glue in plain JAX, hot paths in Pallas)
# -----------------------------------------------------------------------------
@jax.jit
def image_captioning_forward(images_feat_nchw, captions, params):
    B, Cin, H, W = images_feat_nchw.shape
    E = params["w_conv"].shape[1]
    P = H * W

    # --- host-side parameter prep: fusions & bf16 matmul operands ------------
    w_conv = params["w_conv"].astype(jnp.bfloat16)
    w_att = params["w_enc"].astype(jnp.bfloat16)
    b_att = params["b_enc"] + params["b_dec"]     # b_dec folded into enc_att
    dp = {
        "w_dec": params["w_dec"].astype(jnp.bfloat16),
        "w_full": params["w_full"].reshape(1, -1).astype(jnp.float32),
        "w_lstm": jnp.concatenate(
            [params["w_ih_e"], params["w_ih_c"], params["w_hh"]], axis=0
        ).astype(jnp.bfloat16),
        "b_lstm": params["b_ih"] + params["b_hh"],
        "w_fc": params["w_fc"].astype(jnp.bfloat16),
        "b_fc": params["b_fc"],
    }

    # NCHW feature map -> [B*P, Cin]; equals features.reshape(B,E,P).transpose(1,2)
    x2d = jnp.transpose(images_feat_nchw, (0, 2, 3, 1)).reshape(B * P, Cin)
    enc2d, enc_att2d = encoder_forward(
        x2d.astype(jnp.bfloat16), w_conv, params["b_conv"], w_att, b_att)
    enc_feat = enc2d.reshape(B, P, E)
    enc_att = enc_att2d.reshape(B, P, -1)

    # Embedding lookup (gather glue) -> time-major [T, B, Em]
    emb = params["emb_table"][captions]                         # [B, T, Em]
    emb_seq = jnp.transpose(emb, (1, 0, 2)).astype(jnp.bfloat16)

    outs_tbv, alphas_tbp = decoder_with_attention(enc_feat, enc_att, emb_seq, dp)
    outputs = jnp.transpose(outs_tbv, (1, 0, 2))                # [B, T, V]
    alphas = jnp.transpose(alphas_tbp, (1, 0, 2))               # [B, T, P]
    return outputs, alphas


# -----------------------------------------------------------------------------
# Pure-JAX reference (mirrors the kernel's bf16 matmul operands / f32 math)
# -----------------------------------------------------------------------------
def reference_forward(images_feat_nchw, captions, params):
    bf, f32 = jnp.bfloat16, jnp.float32
    B, Cin, H, W = images_feat_nchw.shape
    P = H * W
    D = params["w_hh"].shape[0]
    T = captions.shape[1]

    x = jnp.transpose(images_feat_nchw, (0, 2, 3, 1)).reshape(B, P, Cin)
    enc = jnp.dot(x.astype(bf), params["w_conv"].astype(bf),
                  preferred_element_type=f32) + params["b_conv"]          # [B,P,E]
    enc_bf = enc.astype(bf)
    enc_att = (jnp.dot(enc_bf, params["w_enc"].astype(bf),
                       preferred_element_type=f32)
               + params["b_enc"] + params["b_dec"])                       # [B,P,A]

    emb = params["emb_table"][captions].astype(bf).astype(f32)            # [B,T,Em]
    w_lstm = jnp.concatenate(
        [params["w_ih_e"], params["w_ih_c"], params["w_hh"]], axis=0).astype(bf)
    b_lstm = params["b_ih"] + params["b_hh"]
    w_full = params["w_full"].reshape(1, 1, -1)

    h = jnp.zeros((B, D), f32)
    c = jnp.zeros((B, D), f32)
    outs, als = [], []
    for t in range(T):
        dec_att = jnp.dot(h.astype(bf), params["w_dec"].astype(bf),
                          preferred_element_type=f32)
        act = jnp.maximum(enc_att + dec_att[:, None, :], 0.0)
        att = jnp.sum(act * w_full, axis=-1)
        att = att - jnp.max(att, axis=-1, keepdims=True)
        att_exp = jnp.exp(att)
        alpha = att_exp / jnp.sum(att_exp, axis=-1, keepdims=True)
        context = jnp.einsum("bp,bpe->be", alpha.astype(bf), enc_bf,
                             preferred_element_type=f32)
        xh = jnp.concatenate([emb[:, t, :], context, h], axis=-1).astype(bf)
        gates = jnp.dot(xh, w_lstm, preferred_element_type=f32) + b_lstm
        i_g = jax.nn.sigmoid(gates[:, 0 * D:1 * D])
        f_g = jax.nn.sigmoid(gates[:, 1 * D:2 * D])
        g_g = jnp.tanh(gates[:, 2 * D:3 * D])
        o_g = jax.nn.sigmoid(gates[:, 3 * D:4 * D])
        c = f_g * c + i_g * g_g
        h = o_g * jnp.tanh(c)
        logits = jnp.dot(h.astype(bf), params["w_fc"].astype(bf),
                         preferred_element_type=f32) + params["b_fc"]
        outs.append(logits)
        als.append(alpha)
    return jnp.stack(outs, axis=1), jnp.stack(als, axis=1)


if __name__ == "__main__":
    # Small shapes consistent with the module's forward.
    B, Cin, H, W = 2, 64, 4, 4        # backbone feature map (ResNet stand-in)
    encoder_dim = 32
    embed_size = 16
    attention_dim = 32
    decoder_dim = 32
    vocab_size = 128                  # multiple of 128 -> lane-dense fc stores
    T = 8

    key = jax.random.PRNGKey(0)
    k_feat, k_cap, k_par = jax.random.split(key, 3)

    images_feat = jax.random.normal(k_feat, (B, Cin, H, W), jnp.float32)
    captions = jax.random.randint(k_cap, (B, T), 0, vocab_size, jnp.int32)
    params = make_params(
        k_par, cin=Cin, encoder_dim=encoder_dim, embed_size=embed_size,
        attention_dim=attention_dim, decoder_dim=decoder_dim,
        vocab_size=vocab_size,
    )

    outputs, alphas = image_captioning_forward(images_feat, captions, params)
    jax.block_until_ready((outputs, alphas))

    assert outputs.shape == (B, T, vocab_size)
    assert alphas.shape == (B, T, H * W)
    assert bool(jnp.all(jnp.isfinite(outputs)))
    assert bool(jnp.allclose(jnp.sum(alphas, axis=-1), 1.0, atol=1e-3))

    # Correctness vs a pure-JAX reference with matching bf16 matmul operands.
    ref_out, ref_alpha = reference_forward(images_feat, captions, params)
    jax.block_until_ready((ref_out, ref_alpha))
    assert bool(jnp.allclose(outputs, ref_out, atol=1e-2, rtol=1e-2))
    assert bool(jnp.allclose(alphas, ref_alpha, atol=1e-2, rtol=1e-2))

    print("KERNEL_OK")
</pallas_src>

<mosaic_0001>
module attributes {stable_mosaic.version = 11 : i64} {
  func.func @encoder_kernel(%arg0: i32, %arg1: memref<32x64xbf16, #tpu.memory_space<vmem>>, %arg2: memref<64x32xbf16, #tpu.memory_space<vmem>>, %arg3: memref<1x32xf32, #tpu.memory_space<vmem>>, %arg4: memref<32x32xbf16, #tpu.memory_space<vmem>>, %arg5: memref<1x32xf32, #tpu.memory_space<vmem>>, %arg6: memref<32x32xbf16, #tpu.memory_space<vmem>>, %arg7: memref<32x32xf32, #tpu.memory_space<vmem>>) attributes {dimension_semantics = [#tpu.dimension_semantics<parallel>], iteration_bounds = array<i64: 1>, scalar_prefetch = 0 : i64, scratch_operands = 0 : i64, tpu.core_type = #tpu.core_type<tc>, window_params = [{transform_indices = @transform_0, window_bounds = array<i64: 32, 64>}, {pipeline_mode = #tpu.pipeline_mode<synchronous>, transform_indices = @transform_1, window_bounds = array<i64: 64, 32>}, {pipeline_mode = #tpu.pipeline_mode<synchronous>, transform_indices = @transform_2, window_bounds = array<i64: 1, 32>}, {pipeline_mode = #tpu.pipeline_mode<synchronous>, transform_indices = @transform_3, window_bounds = array<i64: 32, 32>}, {pipeline_mode = #tpu.pipeline_mode<synchronous>, transform_indices = @transform_4, window_bounds = array<i64: 1, 32>}, {transform_indices = @transform_5, window_bounds = array<i64: 32, 32>}, {transform_indices = @transform_6, window_bounds = array<i64: 32, 32>}]} {
    %c0 = arith.constant 0 : index
    %c0_0 = arith.constant 0 : index
    %0 = vector.load %arg1[%c0, %c0_0] : memref<32x64xbf16, #tpu.memory_space<vmem>>, vector<32x64xbf16>
    %c0_1 = arith.constant 0 : index
    %c0_2 = arith.constant 0 : index
    %1 = vector.load %arg2[%c0_1, %c0_2] : memref<64x32xbf16, #tpu.memory_space<vmem>>, vector<64x32xbf16>
    %cst = arith.constant dense<0.000000e+00> : vector<32x32xf32>
    %2 = tpu.matmul %0, %1, %cst {dimension_numbers = #tpu.dot_dimension_numbers<[1], [0], [0], [1], [0, 0, 1, 1], [], []>} : vector<32x64xbf16>, vector<64x32xbf16>, vector<32x32xf32> -> vector<32x32xf32>
    %c0_3 = arith.constant 0 : index
    %c0_4 = arith.constant 0 : index
    %3 = vector.load %arg3[%c0_3, %c0_4] : memref<1x32xf32, #tpu.memory_space<vmem>>, vector<1x32xf32>
    %4 = vector.broadcast %3 : vector<1x32xf32> to vector<32x32xf32>
    %5 = arith.addf %2, %4 : vector<32x32xf32>
    %6 = arith.truncf %5 : vector<32x32xf32> to vector<32x32xbf16>
    %c0_5 = arith.constant 0 : index
    %c0_6 = arith.constant 0 : index
    %7 = vector.load %arg6[%c0_5, %c0_6] : memref<32x32xbf16, #tpu.memory_space<vmem>>, vector<32x32xbf16>
    tpu.vector_store %arg6[%c0_5, %c0_6], %6 {strides = array<i32>} : memref<32x32xbf16, #tpu.memory_space<vmem>>, vector<32x32xbf16>,
    %8 = arith.truncf %5 : vector<32x32xf32> to vector<32x32xbf16>
    %c0_7 = arith.constant 0 : index
    %c0_8 = arith.constant 0 : index
    %9 = vector.load %arg4[%c0_7, %c0_8] : memref<32x32xbf16, #tpu.memory_space<vmem>>, vector<32x32xbf16>
    %cst_9 = arith.constant dense<0.000000e+00> : vector<32x32xf32>
    %10 = tpu.matmul %8, %9, %cst_9 {dimension_numbers = #tpu.dot_dimension_numbers<[1], [0], [0], [1], [0, 0, 1, 1], [], []>} : vector<32x32xbf16>, vector<32x32xbf16>, vector<32x32xf32> -> vector<32x32xf32>
    %c0_10 = arith.constant 0 : index
    %c0_11 = arith.constant 0 : index
    %11 = vector.load %arg5[%c0_10, %c0_11] : memref<1x32xf32, #tpu.memory_space<vmem>>, vector<1x32xf32>
    %12 = vector.broadcast %11 : vector<1x32xf32> to vector<32x32xf32>
    %13 = arith.addf %10, %12 : vector<32x32xf32>
    %c0_12 = arith.constant 0 : index
    %c0_13 = arith.constant 0 : index
    %14 = vector.load %arg7[%c0_12, %c0_13] : memref<32x32xf32, #tpu.memory_space<vmem>>, vector<32x32xf32>
    tpu.vector_store %arg7[%c0_12, %c0_13], %13 {strides = array<i32>} : memref<32x32xf32, #tpu.memory_space<vmem>>, vector<32x32xf32>,
    return
  }
  func.func @transform_0(%arg0: i32) -> (i32, i32) {
    %c0_i32 = arith.constant 0 : i32
    %c0_i32_0 = arith.constant 0 : i32
    return %arg0, %c0_i32 : i32, i32
  }
  func.func @transform_1(%arg0: i32) -> (i32, i32) {
    %c0_i32 = arith.constant 0 : i32
    %c0_i32_0 = arith.constant 0 : i32
    %c0_i32_1 = arith.constant 0 : i32
    return %c0_i32, %c0_i32_0 : i32, i32
  }
  func.func @transform_2(%arg0: i32) -> (i32, i32) {
    %c0_i32 = arith.constant 0 : i32
    %c0_i32_0 = arith.constant 0 : i32
    %c0_i32_1 = arith.constant 0 : i32
    return %c0_i32, %c0_i32_0 : i32, i32
  }
  func.func @transform_3(%arg0: i32) -> (i32, i32) {
    %c0_i32 = arith.constant 0 : i32
    %c0_i32_0 = arith.constant 0 : i32
    %c0_i32_1 = arith.constant 0 : i32
    return %c0_i32, %c0_i32_0 : i32, i32
  }
  func.func @transform_4(%arg0: i32) -> (i32, i32) {
    %c0_i32 = arith.constant 0 : i32
    %c0_i32_0 = arith.constant 0 : i32
    %c0_i32_1 = arith.constant 0 : i32
    return %c0_i32, %c0_i32_0 : i32, i32
  }
  func.func @transform_5(%arg0: i32) -> (i32, i32) {
    %c0_i32 = arith.constant 0 : i32
    %c0_i32_0 = arith.constant 0 : i32
    return %arg0, %c0_i32 : i32, i32
  }
  func.func @transform_6(%arg0: i32) -> (i32, i32) {
    %c0_i32 = arith.constant 0 : i32
    %c0_i32_0 = arith.constant 0 : i32
    return %arg0, %c0_i32 : i32, i32
  }
}

module attributes {stable_mosaic.version = 11 : i64} {
  func.func @decoder_step_kernel(%arg0: i32, %arg1: i32, %arg2: memref<2x16x32xbf16, #tpu.memory_space<vmem>>, %arg3: memref<2x16x32xf32, #tpu.memory_space<vmem>>, %arg4: memref<1x2x16xbf16, #tpu.memory_space<vmem>>, %arg5: memref<32x32xbf16, #tpu.memory_space<vmem>>, %arg6: memref<1x32xf32, #tpu.memory_space<vmem>>, %arg7: memref<80x128xbf16, #tpu.memory_space<vmem>>, %arg8: memref<1x128xf32, #tpu.memory_space<vmem>>, %arg9: memref<32x128xbf16, #tpu.memory_space<vmem>>, %arg10: memref<1x128xf32, #tpu.memory_space<vmem>>, %arg11: memref<1x2x128xf32, #tpu.memory_space<vmem>>, %arg12: memref<1x2x16xf32, #tpu.memory_space<vmem>>, %arg13: memref<2x32xf32, #tpu.memory_space<vmem>>, %arg14: memref<2x32xf32, #tpu.memory_space<vmem>>, %arg15: memref<2x80xf32, #tpu.memory_space<vmem>>) attributes {dimension_semantics = [#tpu.dimension_semantics<parallel>, #tpu.dimension_semantics<arbitrary>], iteration_bounds = array<i64: 1, 8>, scalar_prefetch = 0 : i64, scratch_operands = 3 : i64, tpu.core_type = #tpu.core_type<tc>, window_params = [{transform_indices = @transform_0, window_bounds = array<i64: 2, 16, 32>}, {transform_indices = @transform_1, window_bounds = array<i64: 2, 16, 32>}, {transform_indices = @transform_2, window_bounds = array<i64: 1, 2, 16>}, {pipeline_mode = #tpu.pipeline_mode<synchronous>, transform_indices = @transform_3, window_bounds = array<i64: 32, 32>}, {pipeline_mode = #tpu.pipeline_mode<synchronous>, transform_indices = @transform_4, window_bounds = array<i64: 1, 32>}, {pipeline_mode = #tpu.pipeline_mode<synchronous>, transform_indices = @transform_5, window_bounds = array<i64: 80, 128>}, {pipeline_mode = #tpu.pipeline_mode<synchronous>, transform_indices = @transform_6, window_bounds = array<i64: 1, 128>}, {pipeline_mode = #tpu.pipeline_mode<synchronous>, transform_indices = @transform_7, window_bounds = array<i64: 32, 128>}, {pipeline_mode = #tpu.pipeline_mode<synchronous>, transform_indices = @transform_8, window_bounds = array<i64: 1, 128>}, {transform_indices = @transform_9, window_bounds = array<i64: 1, 2, 128>}, {transform_indices = @transform_10, window_bounds = array<i64: 1, 2, 16>}]} {
    %c0_i32 = arith.constant 0 : i32
    %0 = arith.cmpi eq, %arg1, %c0_i32 : i32
    %1 = arith.extui %0 : i1 to i32
    %c0_i32_0 = arith.constant 0 : i32
    %2 = arith.cmpi ne, %1, %c0_i32_0 : i32
    scf.if %2 {
      %cst_51 = arith.constant 0.000000e+00 : f32
      %83 = vector.broadcast %cst_51 : f32 to vector<2x32xf32>
      %c0_52 = arith.constant 0 : index
      %c0_53 = arith.constant 0 : index
      %84 = vector.load %arg13[%c0_52, %c0_53] : memref<2x32xf32, #tpu.memory_space<vmem>>, vector<2x32xf32>
      tpu.vector_store %arg13[%c0_52, %c0_53], %83 {strides = array<i32>} : memref<2x32xf32, #tpu.memory_space<vmem>>, vector<2x32xf32>,
      %cst_54 = arith.constant 0.000000e+00 : f32
      %85 = vector.broadcast %cst_54 : f32 to vector<2x32xf32>
      %c0_55 = arith.constant 0 : index
      %c0_56 = arith.constant 0 : index
      %86 = vector.load %arg14[%c0_55, %c0_56] : memref<2x32xf32, #tpu.memory_space<vmem>>, vector<2x32xf32>
      tpu.vector_store %arg14[%c0_55, %c0_56], %85 {strides = array<i32>} : memref<2x32xf32, #tpu.memory_space<vmem>>, vector<2x32xf32>,
    } else {
    }
    %c0 = arith.constant 0 : index
    %c0_1 = arith.constant 0 : index
    %c0_2 = arith.constant 0 : index
    %3 = vector.load %arg2[%c0, %c0_1, %c0_2] : memref<2x16x32xbf16, #tpu.memory_space<vmem>>, vector<2x16x32xbf16>
    %c0_3 = arith.constant 0 : index
    %c0_4 = arith.constant 0 : index
    %c0_5 = arith.constant 0 : index
    %4 = vector.load %arg3[%c0_3, %c0_4, %c0_5] : memref<2x16x32xf32, #tpu.memory_space<vmem>>, vector<2x16x32xf32>
    %c0_6 = arith.constant 0 : index
    %c0_7 = arith.constant 0 : index
    %5 = vector.load %arg13[%c0_6, %c0_7] : memref<2x32xf32, #tpu.memory_space<vmem>>, vector<2x32xf32>
    %c0_8 = arith.constant 0 : index
    %c0_9 = arith.constant 0 : index
    %6 = vector.load %arg14[%c0_8, %c0_9] : memref<2x32xf32, #tpu.memory_space<vmem>>, vector<2x32xf32>
    %7 = arith.truncf %5 : vector<2x32xf32> to vector<2x32xbf16>
    %c0_10 = arith.constant 0 : index
    %c0_11 = arith.constant 0 : index
    %8 = vector.load %arg5[%c0_10, %c0_11] : memref<32x32xbf16, #tpu.memory_space<vmem>>, vector<32x32xbf16>
    %cst = arith.constant dense<0.000000e+00> : vector<2x32xf32>
    %9 = tpu.matmul %7, %8, %cst {dimension_numbers = #tpu.dot_dimension_numbers<[1], [0], [0], [1], [0, 0, 1, 1], [], []>} : vector<2x32xbf16>, vector<32x32xbf16>, vector<2x32xf32> -> vector<2x32xf32>
    %10 = vector.shape_cast %9 : vector<2x32xf32> to vector<2x1x32xf32>
    %11 = vector.broadcast %10 : vector<2x1x32xf32> to vector<2x16x32xf32>
    %12 = arith.addf %4, %11 : vector<2x16x32xf32>
    %cst_12 = arith.constant 0.000000e+00 : f32
    %13 = vector.broadcast %cst_12 : f32 to vector<2x16x32xf32>
    %14 = arith.maximumf %12, %13 : vector<2x16x32xf32>
    %c0_13 = arith.constant 0 : index
    %c0_14 = arith.constant 0 : index
    %15 = vector.load %arg6[%c0_13, %c0_14] : memref<1x32xf32, #tpu.memory_space<vmem>>, vector<1x32xf32>
    %16 = vector.shape_cast %15 : vector<1x32xf32> to vector<1x1x32xf32>
    %17 = vector.broadcast %16 : vector<1x1x32xf32> to vector<2x16x32xf32>
    %18 = arith.mulf %14, %17 : vector<2x16x32xf32>
    %cst_15 = arith.constant dense<0.000000e+00> : vector<2x16xf32>
    %19 = vector.multi_reduction <add>, %18, %cst_15 [2] : vector<2x16x32xf32> to vector<2x16xf32>
    %cst_16 = arith.constant dense<0xFF800000> : vector<2xf32>
    %20 = vector.multi_reduction <maximumf>, %19, %cst_16 [1] : vector<2x16xf32> to vector<2xf32>
    %21 = vector.shape_cast %20 : vector<2xf32> to vector<2x1xf32>
    %22 = vector.broadcast %21 : vector<2x1xf32> to vector<2x16xf32>
    %23 = arith.subf %19, %22 : vector<2x16xf32>
    %24 = math.exp %23 : vector<2x16xf32>
    %cst_17 = arith.constant dense<0.000000e+00> : vector<2xf32>
    %25 = vector.multi_reduction <add>, %24, %cst_17 [1] : vector<2x16xf32> to vector<2xf32>
    %26 = vector.shape_cast %25 : vector<2xf32> to vector<2x1xf32>
    %27 = vector.broadcast %26 : vector<2x1xf32> to vector<2x16xf32>
    %28 = arith.divf %24, %27 : vector<2x16xf32>
    %29 = vector.shape_cast %28 : vector<2x16xf32> to vector<2x1x16xf32>
    %30 = arith.truncf %29 : vector<2x1x16xf32> to vector<2x1x16xbf16>
    "tpu.trace_start"() <{level = 10 : i32, message = "bqp,bpe->bqe"}> : () -> ()
    %cst_18 = arith.constant dense<0.000000e+00> : vector<2x1x32xf32>
    %31 = tpu.matmul %30, %3, %cst_18 {dimension_numbers = #tpu.dot_dimension_numbers<[2], [1], [1], [2], [0, 0, 0, 1, 1, 2], [0], [0]>} : vector<2x1x16xbf16>, vector<2x16x32xbf16>, vector<2x1x32xf32> -> vector<2x1x32xf32>
    "tpu.trace_stop"() : () -> ()
    %32 = vector.shape_cast %31 : vector<2x1x32xf32> to vector<2x32xf32>
    %c0_19 = arith.constant 0 : index
    %c0_20 = arith.constant 0 : index
    %c0_21 = arith.constant 0 : index
    %33 = vector.load %arg4[%c0_19, %c0_20, %c0_21] : memref<1x2x16xbf16, #tpu.memory_space<vmem>>, vector<1x2x16xbf16>
    %34 = vector.shape_cast %33 : vector<1x2x16xbf16> to vector<2x16xbf16>
    %35 = arith.extf %34 : vector<2x16xbf16> to vector<2x16xf32>
    %c0_22 = arith.constant 0 : index
    %c0_23 = arith.constant 0 : index
    %36 = vector.load %arg15[%c0_22, %c0_23] : memref<2x80xf32, #tpu.memory_space<vmem>>, vector<2x16xf32>
    tpu.vector_store %arg15[%c0_22, %c0_23], %35 {strides = array<i32>} : memref<2x80xf32, #tpu.memory_space<vmem>>, vector<2x16xf32>,
    %c0_24 = arith.constant 0 : index
    %c16 = arith.constant 16 : index
    %37 = vector.load %arg15[%c0_24, %c16] : memref<2x80xf32, #tpu.memory_space<vmem>>, vector<2x32xf32>
    tpu.vector_store %arg15[%c0_24, %c16], %32 {strides = array<i32>} : memref<2x80xf32, #tpu.memory_space<vmem>>, vector<2x32xf32>,
    %c0_25 = arith.constant 0 : index
    %c48 = arith.constant 48 : index
    %38 = vector.load %arg15[%c0_25, %c48] : memref<2x80xf32, #tpu.memory_space<vmem>>, vector<2x32xf32>
    tpu.vector_store %arg15[%c0_25, %c48], %5 {strides = array<i32>} : memref<2x80xf32, #tpu.memory_space<vmem>>, vector<2x32xf32>,
    %c0_26 = arith.constant 0 : index
    %c0_27 = arith.constant 0 : index
    %39 = vector.load %arg15[%c0_26, %c0_27] : memref<2x80xf32, #tpu.memory_space<vmem>>, vector<2x80xf32>
    %40 = arith.truncf %39 : vector<2x80xf32> to vector<2x80xbf16>
    %c0_28 = arith.constant 0 : index
    %c0_29 = arith.constant 0 : index
    %41 = vector.load %arg7[%c0_28, %c0_29] : memref<80x128xbf16, #tpu.memory_space<vmem>>, vector<80x128xbf16>
    %cst_30 = arith.constant dense<0.000000e+00> : vector<2x128xf32>
    %42 = tpu.matmul %40, %41, %cst_30 {dimension_numbers = #tpu.dot_dimension_numbers<[1], [0], [0], [1], [0, 0, 1, 1], [], []>} : vector<2x80xbf16>, vector<80x128xbf16>, vector<2x128xf32> -> vector<2x128xf32>
    %c0_31 = arith.constant 0 : index
    %c0_32 = arith.constant 0 : index
    %43 = vector.load %arg8[%c0_31, %c0_32] : memref<1x128xf32, #tpu.memory_space<vmem>>, vector<1x128xf32>
    %44 = vector.broadcast %43 : vector<1x128xf32> to vector<2x128xf32>
    %45 = arith.addf %42, %44 : vector<2x128xf32>
    %46 = vector.extract_strided_slice %45 {offsets = [0, 0], sizes = [2, 32], strides = [1, 1]} : vector<2x128xf32> to vector<2x32xf32>
    %47 = arith.negf %46 : vector<2x32xf32>
    %48 = math.exp %47 : vector<2x32xf32>
    %cst_33 = arith.constant 1.000000e+00 : f32
    %49 = vector.broadcast %cst_33 : f32 to vector<2x32xf32>
    %50 = arith.addf %49, %48 : vector<2x32xf32>
    %51 = arith.divf %49, %50 : vector<2x32xf32>
    %52 = vector.extract_strided_slice %45 {offsets = [0, 32], sizes = [2, 32], strides = [1, 1]} : vector<2x128xf32> to vector<2x32xf32>
    %53 = arith.negf %52 : vector<2x32xf32>
    %54 = math.exp %53 : vector<2x32xf32>
    %cst_34 = arith.constant 1.000000e+00 : f32
    %55 = vector.broadcast %cst_34 : f32 to vector<2x32xf32>
    %56 = arith.addf %55, %54 : vector<2x32xf32>
    %57 = arith.divf %55, %56 : vector<2x32xf32>
    %58 = vector.extract_strided_slice %45 {offsets = [0, 64], sizes = [2, 32], strides = [1, 1]} : vector<2x128xf32> to vector<2x32xf32>
    %59 = math.tanh %58 : vector<2x32xf32>
    %60 = vector.extract_strided_slice %45 {offsets = [0, 96], sizes = [2, 32], strides = [1, 1]} : vector<2x128xf32> to vector<2x32xf32>
    %61 = arith.negf %60 : vector<2x32xf32>
    %62 = math.exp %61 : vector<2x32xf32>
    %cst_35 = arith.constant 1.000000e+00 : f32
    %63 = vector.broadcast %cst_35 : f32 to vector<2x32xf32>
    %64 = arith.addf %63, %62 : vector<2x32xf32>
    %65 = arith.divf %63, %64 : vector<2x32xf32>
    %66 = arith.mulf %57, %6 : vector<2x32xf32>
    %67 = arith.mulf %51, %59 : vector<2x32xf32>
    %68 = arith.addf %66, %67 : vector<2x32xf32>
    %69 = math.tanh %68 : vector<2x32xf32>
    %70 = arith.mulf %65, %69 : vector<2x32xf32>
    %c0_36 = arith.constant 0 : index
    %c0_37 = arith.constant 0 : index
    %71 = vector.load %arg13[%c0_36, %c0_37] : memref<2x32xf32, #tpu.memory_space<vmem>>, vector<2x32xf32>
    tpu.vector_store %arg13[%c0_36, %c0_37], %70 {strides = array<i32>} : memref<2x32xf32, #tpu.memory_space<vmem>>, vector<2x32xf32>,
    %c0_38 = arith.constant 0 : index
    %c0_39 = arith.constant 0 : index
    %72 = vector.load %arg14[%c0_38, %c0_39] : memref<2x32xf32, #tpu.memory_space<vmem>>, vector<2x32xf32>
    tpu.vector_store %arg14[%c0_38, %c0_39], %68 {strides = array<i32>} : memref<2x32xf32, #tpu.memory_space<vmem>>, vector<2x32xf32>,
    %73 = arith.truncf %70 : vector<2x32xf32> to vector<2x32xbf16>
    %c0_40 = arith.constant 0 : index
    %c0_41 = arith.constant 0 : index
    %74 = vector.load %arg9[%c0_40, %c0_41] : memref<32x128xbf16, #tpu.memory_space<vmem>>, vector<32x128xbf16>
    %cst_42 = arith.constant dense<0.000000e+00> : vector<2x128xf32>
    %75 = tpu.matmul %73, %74, %cst_42 {dimension_numbers = #tpu.dot_dimension_numbers<[1], [0], [0], [1], [0, 0, 1, 1], [], []>} : vector<2x32xbf16>, vector<32x128xbf16>, vector<2x128xf32> -> vector<2x128xf32>
    %c0_43 = arith.constant 0 : index
    %c0_44 = arith.constant 0 : index
    %76 = vector.load %arg10[%c0_43, %c0_44] : memref<1x128xf32, #tpu.memory_space<vmem>>, vector<1x128xf32>
    %77 = vector.broadcast %76 : vector<1x128xf32> to vector<2x128xf32>
    %78 = arith.addf %75, %77 : vector<2x128xf32>
    %79 = vector.shape_cast %78 : vector<2x128xf32> to vector<1x2x128xf32>
    %c0_45 = arith.constant 0 : index
    %c0_46 = arith.constant 0 : index
    %c0_47 = arith.constant 0 : index
    %80 = vector.load %arg11[%c0_45, %c0_46, %c0_47] : memref<1x2x128xf32, #tpu.memory_space<vmem>>, vector<1x2x128xf32>
    tpu.vector_store %arg11[%c0_45, %c0_46, %c0_47], %79 {strides = array<i32>} : memref<1x2x128xf32, #tpu.memory_space<vmem>>, vector<1x2x128xf32>,
    %81 = vector.shape_cast %28 : vector<2x16xf32> to vector<1x2x16xf32>
    %c0_48 = arith.constant 0 : index
    %c0_49 = arith.constant 0 : index
    %c0_50 = arith.constant 0 : index
    %82 = vector.load %arg12[%c0_48, %c0_49, %c0_50] : memref<1x2x16xf32, #tpu.memory_space<vmem>>, vector<1x2x16xf32>
    tpu.vector_store %arg12[%c0_48, %c0_49, %c0_50], %81 {strides = array<i32>} : memref<1x2x16xf32, #tpu.memory_space<vmem>>, vector<1x2x16xf32>,
    return
  }
  func.func @transform_0(%arg0: i32, %arg1: i32) -> (i32, i32, i32) {
    %c0_i32 = arith.constant 0 : i32
    %c0_i32_0 = arith.constant 0 : i32
    %c0_i32_1 = arith.constant 0 : i32
    return %arg0, %c0_i32, %c0_i32_0 : i32, i32, i32
  }
  func.func @transform_1(%arg0: i32, %arg1: i32) -> (i32, i32, i32) {
    %c0_i32 = arith.constant 0 : i32
    %c0_i32_0 = arith.constant 0 : i32
    %c0_i32_1 = arith.constant 0 : i32
    return %arg0, %c0_i32, %c0_i32_0 : i32, i32, i32
  }
  func.func @transform_2(%arg0: i32, %arg1: i32) -> (i32, i32, i32) {
    %c0_i32 = arith.constant 0 : i32
    %c0_i32_0 = arith.constant 0 : i32
    return %arg1, %arg0, %c0_i32 : i32, i32, i32
  }
  func.func @transform_3(%arg0: i32, %arg1: i32) -> (i32, i32) {
    %c0_i32 = arith.constant 0 : i32
    %c0_i32_0 = arith.constant 0 : i32
    %c0_i32_1 = arith.constant 0 : i32
    return %c0_i32, %c0_i32_0 : i32, i32
  }
  func.func @transform_4(%arg0: i32, %arg1: i32) -> (i32, i32) {
    %c0_i32 = arith.constant 0 : i32
    %c0_i32_0 = arith.constant 0 : i32
    %c0_i32_1 = arith.constant 0 : i32
    return %c0_i32, %c0_i32_0 : i32, i32
  }
  func.func @transform_5(%arg0: i32, %arg1: i32) -> (i32, i32) {
    %c0_i32 = arith.constant 0 : i32
    %c0_i32_0 = arith.constant 0 : i32
    %c0_i32_1 = arith.constant 0 : i32
    return %c0_i32, %c0_i32_0 : i32, i32
  }
  func.func @transform_6(%arg0: i32, %arg1: i32) -> (i32, i32) {
    %c0_i32 = arith.constant 0 : i32
    %c0_i32_0 = arith.constant 0 : i32
    %c0_i32_1 = arith.constant 0 : i32
    return %c0_i32, %c0_i32_0 : i32, i32
  }
  func.func @transform_7(%arg0: i32, %arg1: i32) -> (i32, i32) {
    %c0_i32 = arith.constant 0 : i32
    %c0_i32_0 = arith.constant 0 : i32
    %c0_i32_1 = arith.constant 0 : i32
    return %c0_i32, %c0_i32_0 : i32, i32
  }
  func.func @transform_8(%arg0: i32, %arg1: i32) -> (i32, i32) {
    %c0_i32 = arith.constant 0 : i32
    %c0_i32_0 = arith.constant 0 : i32
    %c0_i32_1 = arith.constant 0 : i32
    return %c0_i32, %c0_i32_0 : i32, i32
  }
  func.func @transform_9(%arg0: i32, %arg1: i32) -> (i32, i32, i32) {
    %c0_i32 = arith.constant 0 : i32
    %c0_i32_0 = arith.constant 0 : i32
    return %arg1, %arg0, %c0_i32 : i32, i32, i32
  }
  func.func @transform_10(%arg0: i32, %arg1: i32) -> (i32, i32, i32) {
    %c0_i32 = arith.constant 0 : i32
    %c0_i32_0 = arith.constant 0 : i32
    return %arg1, %arg0, %c0_i32 : i32, i32, i32
  }
}

</mosaic_0001>

<bundles_post_ra>
// kernel: image_captioning_forward.2
= control target key start
LH: loop header
LB: loop body
LE: loop exit
PB: predicated region body
PF: predicated region fallthrough
CT: control target
= control target key end

     0   :  { %vm76_vm0 = vcmask 523264   ;;  %vm148_vm1 = vcmask 257024   ;;  %vm176_vm2 = vcmask 261120   ;;  %s403_s1 = inlined_call_operand.vmem [shape: bf16[64,32], index: 1, kind: input, shape index: {}]   ;;  %s404_s0 = inlined_call_operand.vmem [shape: bf16[32,64], index: 0, kind: input, shape index: {}]   ;;  %s405_s3 = inlined_call_operand.vmem [shape: bf16[32,32], index: 3, kind: input, shape index: {}]   ;;  %s406_s2 = inlined_call_operand.vmem [shape: f32[1,32], index: 2, kind: input, shape index: {}]   ;;  %s407_s5 = inlined_call_operand.vmem [shape: bf16[32,32], index: 5, kind: output, shape index: {0}]   ;;  %s408_s4 = inlined_call_operand.vmem [shape: f32[1,32], index: 4, kind: input, shape index: {}]   ;;  %s409_s6 = inlined_call_operand.vmem [shape: f32[32,32], index: 6, kind: output, shape index: {1}]  }
   0x1   :  { %v296_v0 = vld [vmem:[%s403_s1] sm:$0xff]   ;;  %v297_v1 = vld [vmem:[%s403_s1 + $0x8] sm:$0xff]   ;;  %v298_v2 = vld [vmem:[%s403_s1 + $0x10] sm:$0xff]  }
   0x2   :  { %276 = vmatprep.subr.bf16.mxu0 %v296_v0  ;;  %v300_v3 = vld [vmem:[%s404_s0] sm:$0xff]   ;;  %v299_v4 = vld [vmem:[%s403_s1 + $0x18] sm:$0xff]   ;;  %v301_v5 = vld [vmem:[%s404_s0 + $0x8] sm:$0xff]  }
   0x3   :  { %277 = vmatpush3.bf16.msra.mxu0 %v296_v0  ;;  %284 = vmatprep.mubr.msk.bf16.mxu0 %vm76_vm0, %v300_v3  ;;  %v302_v6 = vld [vmem:[%s405_s3] sm:$0xff]   ;;  %v303_v7 = vld [vmem:[%s405_s3 + $0x8] sm:$0xff]  }
   0x4   :  { %278 = vmatprep.subr.bf16.mxu0 %v297_v1  ;;  %288 = vmatprep.subr.bf16.mxu1 %v302_v6  ;;  %v244_v8 = vld [vmem:[%s406_s2] ss:$0 sm:$0xff] }
   0x5   :  { %289 = vmatpush3.bf16.msra.mxu1 %v302_v6  ;;  %v257_v23 = vld [vmem:[%s408_s4] ss:$0 sm:$0xff] }
   0x6   :  { %290 = vmatprep.subr.bf16.mxu1 %v303_v7 }
   0x7   :  { %279 = vmatpush3.bf16.msra.mxu0 %v297_v1 }
   0x8   :  { %280 = vmatprep.subr.bf16.mxu0 %v298_v2 }
   0x9   :  { %291 = vmatpush3.bf16.msra.mxu1 %v303_v7 }
   0xb   :  { %281 = vmatpush3.bf16.msra.mxu0 %v298_v2 }
   0xc   :  { %282 = vmatprep.subr.bf16.mxu0 %v299_v4 }
   0xf   :  { %283 = vmatpush3.bf16.msra.mxu0 %v299_v4 }
  0x12   :  { %285 = vmatmul.mubr.msk.bf16.vlgmr.msra.gmra.mrb[0].mxu0 %vm76_vm0, %v301_v5 }
  0xe5   :  { %v286_v9 = vpop.f32.mrb[0].mxu0 }
  0xe6   :  { %v126_v10 = vadd.f32 %v286_v9, %v244_v8  ;;  %v117_v11 = vpop.f32.mrb[1].mxu0 }
  0xe7   :  { %v118_v12 = vadd.f32 %v244_v8, %v117_v11  ;;  %v287_v13 = vpop.f32.mrb[2].mxu0 }
  0xe8   :  { %v264_v14 = vpack.c.bf16 %v126_v10, %v126_v10  ;;  %v129_v15 = vadd.f32 %v287_v13, %v244_v8  ;;  %v120_v16 = vpop.f32.mrb[3].mxu0 }
  0xe9   :  { %v262_v17 = vpack.c.bf16 %v118_v12, %v118_v12  ;;  %v121_v18 = vadd.f32 %v244_v8, %v120_v16 }
  0xea   :  { %151 = vst.msk [vmem:[%s407_s5 + $0x8] sm:$0xf] %vm148_vm1, %v264_v14  ;;  %v133_v19 = vpack.c.bf16 %v129_v15, %v126_v10  ;;  %v265_v20 = vpack.c.bf16 %v129_v15, %v129_v15 }
  0xeb   :  { %149 = vst.msk [vmem:[%s407_s5] sm:$0xf] %vm148_vm1, %v262_v17  ;;  %v263_v21 = vpack.c.bf16 %v121_v18, %v121_v18  ;;  %v132_v22 = vpack.c.bf16 %v121_v18, %v118_v12 }
  0xec   :  { %152 = vst.msk [vmem:[%s407_s5 + $0xc] sm:$0xf] %vm148_vm1, %v265_v20 }
  0xed   :  { %150 = vst.msk [vmem:[%s407_s5 + $0x4] sm:$0xf] %vm148_vm1, %v263_v21  ;;  %292 = vmatprep.mubr.msk.bf16.mxu1 %vm176_vm2, %v132_v22 }
  0xee   :  { %293 = vmatmul.mubr.msk.bf16.vlgmr.msra.gmra.mrb[0].mxu1 %vm176_vm2, %v133_v19 }
 0x1c1   :  { %v294_v24 = vpop.f32.mrb[0].mxu1 }
 0x1c2   :  { %v226_v25 = vadd.f32 %v294_v24, %v257_v23  ;;  %v217_v26 = vpop.f32.mrb[1].mxu1 }
 0x1c3   :  { %v218_v27 = vadd.f32 %v257_v23, %v217_v26  ;;  %v295_v28 = vpop.f32.mrb[2].mxu1 }
 0x1c4   :  { %234 = vst.msk [vmem:[%s409_s6 + $0x10] sm:$0xff] %vm176_vm2, %v226_v25  ;;  %v229_v29 = vadd.f32 %v295_v28, %v257_v23  ;;  %v220_v30 = vpop.f32.mrb[3].mxu1 }
 0x1c5   :  { %232 = vst.msk [vmem:[%s409_s6] sm:$0xff] %vm176_vm2, %v218_v27  ;;  %v221_v31 = vadd.f32 %v257_v23, %v220_v30 }
 0x1c6   :  { %235 = vst.msk [vmem:[%s409_s6 + $0x18] sm:$0xff] %vm176_vm2, %v229_v29 }
 0x1c7   :  { %233 = vst.msk [vmem:[%s409_s6 + $0x8] sm:$0xff] %vm176_vm2, %v221_v31 }

// kernel: image_captioning_forward.3
= control target key start
LH: loop header
LB: loop body
LE: loop exit
PB: predicated region body
PF: predicated region fallthrough
CT: control target
= control target key end

     0   :  { %s1493_s13 = smov 0   ;;  %s1495_s14 = smov 0   ;;  %s1697_s0 = inlined_call_operand.vmem [shape: bf16[2,16,32], index: 0, kind: input, shape index: {}]   ;;  %s1698_s1 = inlined_call_operand.vmem [shape: f32[2,16,32], index: 1, kind: input, shape index: {}]   ;;  %s1699_s2 = inlined_call_operand.vmem [shape: bf16[8,2,16], index: 2, kind: input, shape index: {}]   ;;  %s1700_s3 = inlined_call_operand.vmem [shape: bf16[32,32], index: 3, kind: input, shape index: {}]   ;;  %s1701_s4 = inlined_call_operand.vmem [shape: f32[1,32], index: 4, kind: input, shape index: {}]   ;;  %s1702_s5 = inlined_call_operand.vmem [shape: bf16[80,128], index: 5, kind: input, shape index: {}]   ;;  %s1703_s6 = inlined_call_operand.vmem [shape: f32[1,128], index: 6, kind: input, shape index: {}]   ;;  %s1704_s7 = inlined_call_operand.vmem [shape: bf16[32,128], index: 7, kind: input, shape index: {}]   ;;  %s1705_s8 = inlined_call_operand.vmem [shape: f32[1,128], index: 8, kind: input, shape index: {}]   ;;  %s1706_s9 = inlined_call_operand.vmem [shape: f32[8,2,128], index: 9, kind: output, shape index: {0}]   ;;  %s1707_s10 = inlined_call_operand.vmem [shape: f32[8,2,16], index: 10, kind: output, shape index: {1}]  }
   0x1   :  { %s1497_s15 = smov 0  }
   0x2 LB: > { %s30_s16 = sadd.s32 1, %s1422_s14  ;;  %p1253_p0 = scmp.ge.s32.totalorder %s1426_s15, 1  ;;  %s1426_s15 = sphi %s1497_s15, %s21_s15   ;;  %s1422_s14 = sphi %s1495_s14, %s1709_s14   ;;  %s1418_s13 = sphi %s1493_s13, %s1708_s13  }
   0x3   : > { %p31_p1 = scmp.ge.s32.totalorder %s30_s16, 8  ;;  %p358_p2 = scmp.lt.s32.totalorder %s1426_s15, 9 }
   0x5   : > { %s1711_s16 = smov (%p31_p1, %s30_s16), 0  ;;  %p359_p3 = pnand %p1253_p0, %p358_p2 }
   0x6   : > { %p432_p4 = scmp.lt.s32.totalorder (!%p359_p3), %s1418_s13, 7  ;;  %p1256_p5 = scmp.ne.s32.totalorder (!%p359_p3), %s1418_s13, 0 }
   0x7   : > { %362 = sbr.rel (%p359_p3) target bundleno = 2275 (0x8e3), region = 56 }
   0xe   : > { %s1511_s17 = scalar_select %p432_p4, %s1418_s13, 7 }
   0xf   : > { %456 = sbr.rel (%p1256_p5) target bundleno = 22 (0x16), region = 60  ;;  %vm457_vm0 = vcmask (!%p1256_p5), 254976   ;;  %v1428_v0 = vmov (!%p1256_p5), 0.0  }
  0x10   : > { %s437_s20 = scalar_lea.vmem %s1699_s2, %s1511_s17  ;;  %s1254_s21 = sshll.u32 %s1511_s17, 1  ;;  %458 = vst.msk [vmem:[#allocation2] sm:$0x3] (!%p1256_p5), %vm457_vm0, %v1428_v0  ;;  %459 = vst.msk [vmem:[#allocation3] sm:$0x3] (!%p1256_p5), %vm457_vm0, %v1428_v0 }
  0x11   : > { %s1521_s24 = scalar_lea.vmem %s1706_s9, %s1254_s21  ;;  %s1526_s27 = scalar_lea.vmem %s1707_s10, %s1254_s21 }
  0x16 PF: > { %v1373_v1 = vld [vmem:[%s1700_s3] sm:$0xff]   ;;  %v1429_v2 = vmov 0.0   ;;  %v1374_v3 = vld [vmem:[%s1700_s3 + $0x8] sm:$0xff]   ;;  %vm1430_vm1 = vmmov 0   ;;  %vm487_vm2 = vcmask 261120   ;;  %v535_v8 = vlaneseq  ;;  %v466_v24 = vld [vmem:[%s1698_s1 + $0x10] sm:$0xff] }
  0x17   : > { %1295 = vmatprep.subr.bf16.mxu0 %v1429_v2  ;;  %1303 = vmatprep.subr.bf16.mxu1 %v1429_v2  ;;  %v1538_v4 = vld [vmem:[#allocation2] sm:$0x3]  ;;  %v1431_v6 = vmov 1966171168   ;;  %v465_v21 = vld [vmem:[%s1698_s1 + $0x8] sm:$0xff]  ;;  %v467_v25 = vld [vmem:[%s1698_s1 + $0x18] sm:$0xff] }
  0x18   : > { %1296 = vmatpush3.bf16.msra.mxu0 %v1373_v1  ;;  %1299 = vmatprep.mubr.msk.bf16.mxu0 %vm1430_vm1, %v1429_v2  ;;  %v470_v5 = vpack.c.bf16 %v1538_v4, %v1538_v4  ;;  %v533_v7 = vunpack.c.l.s4 %v1431_v6  ;;  %v1549_v10 = vshrl.u32 %v535_v8, 7  ;;  %v464_v20 = vld [vmem:[%s1698_s1] sm:$0xff]  ;;  %v600_v44 = vand.u32 127, %v535_v8  ;;  %s1433_s22 = smov 48   ;;  %s1434_s11 = smov 16  }
  0x19   : > { %1297 = vmatprep.subr.bf16.mxu0 %v1429_v2  ;;  %1305 = vmatprep.mubr.msk.bf16.mxu1 %vm1430_vm1, %v1429_v2  ;;  %v1260_v29 = vld [vmem:[%s1701_s4] ss:$0 sm:$0xff]  ;;  %vm610_vm3 = vcmask 130112   ;;  %vm621_vm4 = vcmask 1041409   ;;  %vm624_vm5 = vcmask 123904   ;;  %v1432_v60 = vmov 0  }
  0x1a   : > { %v534_v9 = vunpack.c.0.s8 %v533_v7  ;;  %v1553_v14 = vsub.s32 0, %v1549_v10  ;;  %v605_v45 = vadd.s32 4294967288, %v600_v44  ;;  %v1580_v49 = vsub.s32 %v600_v44, %v1549_v10  ;;  %1372 = vset.pattern.permute.xlu0 %v1432_v60  ;;  %1371 = vset.pattern.permute.xlu1 %v1432_v60  ;;  %s1435_s18 = smov 64   ;;  %s1436_s19 = smov 32  }
  0x1b   : > { %v635_v61 = vsub.s32 1, %v1549_v10  ;;  %vm734_vm6 = vcmask 130048   ;;  %vm856_vm7 = vcmask 386176   ;;  %vm862_vm8 = vcmask 648576   ;;  %s1437_s26 = smov 96  }
  0x1c   : > { %1298 = vmatpush3.bf16.msra.mxu0 %v1374_v3  ;;  %v537_v11 = vsub.s32 %v534_v9, %v1549_v10  ;;  %v1577_v47 = vsub.s32 %v605_v45, %v1549_v10  ;;  %vm913_vm9 = vcmask 654336   ;;  %vm989_vm10 = vcmask 254976  }
  0x1d   : > { %1315 = vmatprep.subr.bf16.mxu0 %v1429_v2 }
  0x1f   : > { %1300 = vmatmul.mubr.msk.bf16.vlgmr.msra.gmra.mrb[0].mxu0 %vm487_vm2, %v470_v5 }
  0x20   : > { %1325 = vmatprep.mubr.msk.bf16.mxu0 %vm1430_vm1, %v1429_v2 }
  0xf2   : > { %v525_v12 = vpop.f32.mrb[0].mxu0 }
  0xf3   : > { %v538_v13 = vrot.slane %v525_v12, %v537_v11  ;;  %v1301_v15 = vpop.f32.mrb[1].mxu0 }
  0xf4   : > { %v528_v16 = vpop.f32.mrb[2].mxu0 }
  0xf5   : > { %v539_v17 = vcombine.high %v538_v13, %v538_v13  ;;  %v546_v18 = vrot.slane %v538_v13, %v537_v11  ;;  %v1302_v19 = vpop.f32.mrb[3].mxu0 }
  0xf7   : > { %v553_v22 = vrot.slane %v539_v17, %v537_v11  ;;  %v557_v23 = vrot.slane %v546_v18, %v1553_v14 }
  0xf9   : > { %v564_v26 = vadd.f32 %v557_v23, %v464_v20  ;;  %v561_v27 = vrot.slane %v553_v22, %v1553_v14  ;;  %v565_v28 = vadd.f32 %v557_v23, %v465_v21 }
  0xfb   : > { %v568_v30 = vmax.f32 %v564_v26, 0.0  ;;  %v566_v31 = vadd.f32 %v561_v27, %v466_v24  ;;  %v569_v32 = vmax.f32 %v565_v28, 0.0  ;;  %v567_v33 = vadd.f32 %v561_v27, %v467_v25 }
  0xfd   : > { %v579_v34 = vmul.f32 %v1260_v29, %v568_v30  ;;  %v570_v35 = vmax.f32 %v566_v31, 0.0  ;;  %v571_v36 = vmax.f32 %v567_v33, 0.0  ;;  %v580_v39 = vmul.f32 %v1260_v29, %v569_v32 }
  0xff   : > { %v583_v37 = vsel %vm487_vm2, %v579_v34, 0.0  ;;  %v581_v38 = vmul.f32 %v1260_v29, %v570_v35  ;;  %v582_v41 = vmul.f32 %v1260_v29, %v571_v36  ;;  %v586_v42 = vsel %vm487_vm2, %v580_v39, 0.0 }
 0x100   : > { %584 = vadd.xlane.f32.xlu0 %v583_v37 }
 0x101   : > { %v589_v40 = vsel %vm487_vm2, %v581_v38, 0.0  ;;  %v592_v43 = vsel %vm487_vm2, %v582_v41, 0.0  ;;  %v1375_v41 = vld [vmem:[%s1697_s0] sm:$0xff]  }
 0x102   : > { %590 = vadd.xlane.f32.xlu1 %v589_v40  ;;  %1304 = vmatpush3.bf16.msra.mxu1 %v1375_v41 }
 0x103   : > { %1309 = vmatprep.subr.bf16.mxu1 %v1429_v2 }
 0x104   : > { %587 = vadd.xlane.f32.xlu0 %v586_v42 }
 0x106   : > { %593 = vadd.xlane.f32.xlu1 %v592_v43 }
 0x18d   : > { %v585_v46 = vpop.xlane.xlu0 %584 }
 0x18e   : > { %v604_v53 = vrot.slane %v585_v46, %v1580_v49 }
 0x18f   : > { %v591_v48 = vpop.xlane.xlu1 %590 }
 0x190   : > { %v615_v54 = vrot.slane %v591_v48, %v1580_v49 }
 0x191   : > { %v588_v50 = vpop.xlane.xlu0 %587 }
 0x192   : > { %v609_v51 = vrot.slane %v588_v50, %v1577_v47 }
 0x193   : > { %v594_v52 = vpop.xlane.xlu1 %593 }
 0x194   : > { %v619_v55 = vrot.slane %v594_v52, %v1577_v47  ;;  %v611_v56 = vsel %vm610_vm3, %v609_v51, %v604_v53 }
 0x196   : > { %v620_v57 = vsel %vm610_vm3, %v619_v55, %v615_v54 }
 0x197   : > { %v622_v58 = vsel %vm621_vm4, %v620_v57, %v611_v56 }
 0x198   : > { %v625_v59 = vsel %vm624_vm5, %v622_v58, -inf  ;;  %v1377_v58 = vld [vmem:[%s1702_s5] sm:$0xff]  }
 0x199   : > { %626 = vmax.xlane.f32.xlu0 %v625_v59  ;;  %v846_v59 = vld [vmem:[%s437_s20] sm:$0x1]  ;;  %1316 = vmatpush3.bf16.msra.mxu0 %v1377_v58 }
 0x19a   : > { %v847_v60 = vunpack.c.l.bf16 %v846_v59  ;;  %1317 = vmatprep.subr.bf16.mxu0 %v1429_v2 }
 0x19c   : > { %848 = vst.msk [vmem:[#allocation4] sm:$0x3] %vm624_vm5, %v847_v60 }
 0x226   : > { %v627_v62 = vpop.xlane.xlu0 %626 }
 0x227   : > { %v632_v63 = vrot.slane %v627_v62, %v1553_v14  ;;  %v636_v0 = vrot.slane %v627_v62, %v635_v61  ;;  %v1379_v62 = vld [vmem:[%s1702_s5 + $0x10] sm:$0xff]  }
 0x229   : > { %v639_v1 = vsub.f32 %v585_v46, %v632_v63  ;;  %v640_v3 = vsub.f32 %v588_v50, %v632_v63  ;;  %v641_v5 = vsub.f32 %v591_v48, %v636_v0  ;;  %v642_v8 = vsub.f32 %v594_v52, %v636_v0  ;;  %v1376_v50 = vld [vmem:[%s1697_s0 + $0x8] sm:$0xff]  }
 0x22b   : > { %v643_v6 = vmul.f32 1.442695, %v639_v1  ;;  %v645_v7 = vmul.f32 1.442695, %v640_v3  ;;  %v647_v9 = vmul.f32 1.442695, %v641_v5 }
 0x22c   : > { %v649_v11 = vmul.f32 1.442695, %v642_v8  ;;  %v1381_v5 = vld [vmem:[%s1702_s5 + $0x20] sm:$0xff]  }
 0x22d   : > { %1384 = vpow2.f32 %v643_v6 }
 0x22e   : > { %1386 = vpow2.f32 %v645_v7 }
 0x22f   : > { %1388 = vpow2.f32 %v647_v9 }
 0x230   : > { %1390 = vpow2.f32 %v649_v11 }
 0x237   : > { %v1385_v12 = vpop.eup %1384 }
 0x238   : > { %v1387_v13 = vpop.eup %1386  ;;  %656 = vperm.xlu1 %1371, %v1385_v12  }
 0x239   : > { %659 = vperm.xlu0 %1372, %v1387_v13   ;;  %v1389_v10 = vpop.eup %1388 }
 0x23a   : > { %v1391_v15 = vpop.eup %1390 }
 0x23c   : > { %662 = vperm.xlu1 %1371, %v1389_v10  }
 0x240   : > { %665 = vperm.xlu1 %1371, %v1391_v15  }
 0x2b7   : > { %v657_v16 = vpop.permute.xlu1 %656 }
 0x2b8   : > { %v660_v17 = vpop.permute.xlu0 %659  ;;  %v670_v20 = vrot.slane %v657_v16, %v1580_v49 }
 0x2b9   : > { %v674_v19 = vrot.slane %v660_v17, %v1577_v47  ;;  %v1265_v17 = vld [vmem:[%s1703_s6] ss:$0 sm:$0xff] }
 0x2bb   : > { %v663_v18 = vpop.permute.xlu1 %662  ;;  %v675_v24 = vsel %vm610_vm3, %v674_v19, %v670_v20 }
 0x2bc   : > { %v679_v22 = vrot.slane %v663_v18, %v1580_v49 }
 0x2bf   : > { %v666_v21 = vpop.permute.xlu1 %665 }
 0x2c0   : > { %v683_v23 = vrot.slane %v666_v21, %v1577_v47 }
 0x2c2   : > { %v684_v25 = vsel %vm610_vm3, %v683_v23, %v679_v22 }
 0x2c3   : > { %v685_v26 = vsel %vm621_vm4, %v684_v25, %v675_v24  ;;  %v469_v24 = vld [vmem:[#allocation3] sm:$0x3] }
 0x2c4   : > { %v687_v27 = vsel %vm624_vm5, %v685_v26, 0.0 }
 0x2c5   : > { %688 = vadd.xlane.f32.xlu1 %v687_v27 }
 0x352   : > { %v689_v28 = vpop.xlane.xlu1 %688 }
 0x353   : > { %v694_v29 = vrot.slane %v689_v28, %v1553_v14  ;;  %v698_v30 = vrot.slane %v689_v28, %v635_v61  ;;  %v1378_v61 = vld [vmem:[%s1702_s5 + $0x8] sm:$0xff]  }
 0x354   : > { %1318 = vmatpush3.bf16.msra.mxu0 %v1378_v61 }
 0x355   : > { %1392 = vrcp.f32 %v694_v29  ;;  %1319 = vmatprep.subr.bf16.mxu0 %v1429_v2 }
 0x356   : > { %1394 = vrcp.f32 %v698_v30 }
 0x358   : > { %1320 = vmatpush3.bf16.msra.mxu0 %v1379_v62 }
 0x359   : > { %1321 = vmatprep.subr.bf16.mxu0 %v1429_v2 }
 0x35f   : > { %v1393_v31 = vpop.eup %1392 }
 0x360   : > { %v1601_v32 = vmul.f32 %v1393_v31, %v1385_v12  ;;  %v1603_v33 = vmul.f32 %v1393_v31, %v1387_v13  ;;  %v1395_v34 = vpop.eup %1394 }
 0x361   : > { %v1607_v37 = vmul.f32 %v1395_v34, %v1389_v10  ;;  %v1609_v38 = vmul.f32 %v1395_v34, %v1391_v15 }
 0x362   : > { %v707_v35 = vpack.c.bf16 %v1603_v33, %v1601_v32 }
 0x363   : > { %v708_v14 = vpack.c.bf16 %v1609_v38, %v1607_v37 }
 0x364   : > { %v710_v36 = vunpack.c.l.b16 %v707_v35  ;;  %v711_v39 = vunpack.c.h.b16 %v707_v35 }
 0x365   : > { %v779_v40 = vunpack.c.l.b16 %v708_v14  ;;  %v780_v42 = vunpack.c.h.b16 %v708_v14  ;;  %v1382_v14 = vld [vmem:[%s1704_s7] sm:$0xff]  }
 0x366   : > { %713 = vperm.xlu0 %1372, %v710_v36  }
 0x36a   : > { %716 = vperm.xlu0 %1372, %v711_v39  }
 0x36e   : > { %782 = vperm.xlu0 %1372, %v779_v40   ;;  %v1383_v40 = vld [vmem:[%s1704_s7 + $0x8] sm:$0xff]  }
 0x372   : > { %785 = vperm.xlu0 %1372, %v780_v42  }
 0x376   : > { %859 = vrot.lane.b32.xlu0 %v1538_v4, %s1433_s22  ;;  %v1380_v4 = vld [vmem:[%s1702_s5 + $0x18] sm:$0xff]  }
 0x377   : > { %1322 = vmatpush3.bf16.msra.mxu0 %v1380_v4 }
 0x378   : > { %1323 = vmatprep.subr.bf16.mxu0 %v1429_v2 }
 0x37b   : > { %1324 = vmatpush3.bf16.msra.mxu0 %v1381_v5 }
 0x3e5   : > { %v714_v43 = vpop.permute.xlu0 %713 }
 0x3e6   : > { %v721_v45 = vrot.slane %v714_v43, %v1580_v49 }
 0x3e9   : > { %v717_v44 = vpop.permute.xlu0 %716 }
 0x3ea   : > { %v725_v46 = vrot.slane %v717_v44, %v1577_v47 }
 0x3ec   : > { %v726_v48 = vsel %vm610_vm3, %v725_v46, %v721_v45 }
 0x3ed   : > { %v727_v51 = vpack.c.b16 %v726_v48, %v726_v48  ;;  %v783_v52 = vpop.permute.xlu0 %782 }
 0x3ee   : > { %v790_v54 = vrot.slane %v783_v52, %v1580_v49 }
 0x3ef   : > { %1306 = vmatmul.mubr.msk.bf16.vlgmr.msra.gmra.mrb[0].mxu1 %vm734_vm6, %v727_v51 }
 0x3f0   : > { %1310 = vmatpush3.bf16.msra.mxu1 %v1376_v50  ;;  %1311 = vmatprep.mubr.msk.bf16.mxu1 %vm1430_vm1, %v1429_v2 }
 0x3f1   : > { %v786_v53 = vpop.permute.xlu0 %785  ;;  %1329 = vmatprep.subr.bf16.mxu1 %v1429_v2 }
 0x3f2   : > { %v794_v55 = vrot.slane %v786_v53, %v1577_v47 }
 0x3f4   : > { %v795_v56 = vsel %vm610_vm3, %v794_v55, %v790_v54  ;;  %v1273_v55 = vld [vmem:[%s1705_s8] ss:$0 sm:$0xff] }
 0x3f5   : > { %v796_v57 = vpack.c.b16 %v795_v56, %v795_v56  ;;  %v860_v13 = vpop.permute.xlu0 %859 }
 0x3f7   : > { %1312 = vmatmul.mubr.msk.bf16.vlgmr.msra.gmra.mrb[4].mxu1 %vm734_vm6, %v796_v57 }
 0x3f8   : > { %1333 = vmatprep.mubr.msk.bf16.mxu1 %vm1430_vm1, %v1429_v2  ;;  %1330 = vmatpush3.bf16.msra.mxu1 %v1382_v14 }
 0x3f9   : > { %1331 = vmatprep.subr.bf16.mxu1 %v1429_v2 }
 0x3fc   : > { %1332 = vmatpush3.bf16.msra.mxu1 %v1383_v40 }
 0x4c2   : > { %v772_v63 = vpop.f32.mrb[0].mxu1 }
 0x4c3   : > { %v1307_v0 = vpop.f32.mrb[1].mxu1 }
 0x4c4   : > { %v775_v1 = vpop.f32.mrb[2].mxu1 }
 0x4c5   : > { %v1308_v3 = vpop.f32.mrb[3].mxu1 }
 0x4ca   : > { %v840_v6 = vpop.f32.mrb[4].mxu1 }
 0x4cb   : > { %v851_v7 = vrot.slane %v840_v6, 7  ;;  %v1313_v8 = vpop.f32.mrb[5].mxu1 }
 0x4cc   : > { %v843_v9 = vpop.f32.mrb[6].mxu1 }
 0x4cd   : > { %v1314_v11 = vpop.f32.mrb[7].mxu1  ;;  %v852_v12 = vsel %vm621_vm4, %v851_v7, %v772_v63 }
 0x4ce   : > { %853 = vrot.lane.b32.xlu1 %v852_v12, %s1434_s11 }
 0x540   : > { %v854_v10 = vpop.permute.xlu1 %853 }
 0x541   : > { %857 = vst.msk [vmem:[#allocation4] sm:$0x3] %vm856_vm7, %v854_v10 }
 0x542   : > { %863 = vst.msk [vmem:[#allocation4] sm:$0x3] %vm862_vm8, %v860_v13 }
 0x549   : > { %v864_v15 = vld [vmem:[#allocation4] sm:$0x3] }
 0x54a   : > { %v865_v16 = vpack.c.bf16 %v864_v15, %v864_v15 }
 0x54c   : > { %1326 = vmatmul.mubr.msk.bf16.vlgmr.msra.gmra.mrb[4].mxu0 %vm913_vm9, %v865_v16 }
 0x61f   : > { %v951_v18 = vpop.f32.mrb[4].mxu0 }
 0x620   : > { %v952_v19 = vadd.f32 %v1265_v17, %v951_v18  ;;  %v1327_v20 = vpop.f32.mrb[5].mxu0 }
 0x621   : > { %v954_v21 = vpop.f32.mrb[6].mxu0 }
 0x622   : > { %1396 = vtanh.f32 %v952_v19  ;;  %v1328_v22 = vpop.f32.mrb[7].mxu0  ;;  %v1272_v25 = vmul.f32 -1.442695, %v952_v19 }
 0x624   : > { %1398 = vpow2.f32 %v1272_v25 }
 0x62c   : > { %v1397_v23 = vpop.eup %1396 }
 0x62d   : > { %970 = vrot.lane.b32.xlu0 %v1397_v23, %s1435_s18 }
 0x62e   : > { %v1399_v26 = vpop.eup %1398 }
 0x62f   : > { %v960_v27 = vadd.f32 1.0, %v1399_v26 }
 0x631   : > { %965 = vrot.lane.b32.xlu0 %v469_v24, %s1436_s19  ;;  %1400 = vrcp.f32 %v960_v27 }
 0x63b   : > { %v1401_v28 = vpop.eup %1400 }
 0x69f   : > { %v971_v29 = vpop.permute.xlu0 %970 }
 0x6a0   : > { %v973_v30 = vmul.f32 %v1401_v28, %v971_v29 }
 0x6a2   : > { %975 = vrot.lane.b32.xlu0 %v973_v30, %s1436_s19 }
 0x6a3   : > { %v966_v31 = vpop.permute.xlu0 %965 }
 0x6a4   : > { %v968_v34 = vmul.f32 %v1401_v28, %v966_v31 }
 0x714   : > { %v976_v35 = vpop.permute.xlu0 %975 }
 0x715   : > { %v978_v36 = vadd.f32 %v976_v35, %v968_v34 }
 0x717   : > { %1402 = vtanh.f32 %v978_v36 }
 0x721   : > { %v1403_v39 = vpop.eup %1402 }
 0x722   : > { %981 = vrot.lane.b32.xlu1 %v1403_v39, %s1435_s18 }
 0x726   : > { %1072 = vperm.xlu1 %1371, %v1601_v32  }
 0x72a   : > { %1078 = vperm.xlu1 %1371, %v1607_v37  }
 0x794   : > { %v982_v41 = vpop.permute.xlu1 %981 }
 0x795   : > { %v984_v42 = vmul.f32 %v1401_v28, %v982_v41 }
 0x797   : > { %v996_v43 = vpack.c.bf16 %v984_v42, %v984_v42  ;;  %986 = vrot.lane.b32.xlu1 %v984_v42, %s1436_s19 }
 0x799   : > { %1009 = vrot.lane.b32.xlu0 %v996_v43, %s1436_s19 }
 0x79d   : > { %1075 = vperm.xlu0 %1372, %v1603_v33  }
 0x7a1   : > { %1081 = vperm.xlu0 %1372, %v1609_v38  }
 0x7a5   : > { %992 = vrot.lane.b32.xlu0 %v978_v36, %s1437_s26  ;;  %v1073_v32 = vpop.permute.xlu1 %1072 }
 0x7a6   : > { %v1086_v33 = vrot.slane %v1073_v32, %v1580_v49 }
 0x7a9   : > { %v1079_v37 = vpop.permute.xlu1 %1078 }
 0x7aa   : > { %v1095_v38 = vrot.slane %v1079_v37, %v1580_v49 }
 0x809   : > { %v987_v44 = vpop.permute.xlu1 %986 }
 0x80a   : > { %990 = vst.msk [vmem:[#allocation2] sm:$0x3] %vm989_vm10, %v987_v44 }
 0x80b   : > { %v1010_v2 = vpop.permute.xlu0 %1009 }
 0x80c   : > { %1334 = vmatmul.mubr.msk.bf16.vlgmr.msra.gmra.mrb[8].mxu1 %vm487_vm2, %v1010_v2 }
 0x81c   : > { %v1076_v45 = vpop.permute.xlu0 %1075 }
 0x81d   : > { %v1090_v46 = vrot.slane %v1076_v45, %v1577_v47 }
 0x81f   : > { %v1091_v51 = vsel %vm610_vm3, %v1090_v46, %v1086_v33 }
 0x820   : > { %v1082_v48 = vpop.permute.xlu0 %1081 }
 0x821   : > { %v1099_v50 = vrot.slane %v1082_v48, %v1577_v47 }
 0x823   : > { %v1100_v52 = vsel %vm610_vm3, %v1099_v50, %v1095_v38 }
 0x824   : > { %v1101_v53 = vsel %vm621_vm4, %v1100_v52, %v1091_v51  ;;  %v993_v54 = vpop.permute.xlu0 %992 }
 0x825   : > { %1103 = vst.msk [vmem:[%s1526_s27] sm:$0x3] %vm624_vm5, %v1101_v53 }
 0x826   : > { %995 = vst.msk [vmem:[#allocation3] sm:$0x3] %vm989_vm10, %v993_v54 }
 0x8df   : > { %v1060_v56 = vpop.f32.mrb[8].mxu1 }
 0x8e0   : > { %v1061_v57 = vadd.f32 %v1273_v55, %v1060_v56  ;;  %v1335_v49 = vpop.f32.mrb[9].mxu1 }
 0x8e1   : > { %v1063_v58 = vpop.f32.mrb[10].mxu1 }
 0x8e2   : > { %1066 = vst [vmem:[%s1521_s24] sm:$0x3] %v1061_v57  ;;  %v1336_v47 = vpop.f32.mrb[11].mxu1 }
 0x8e3 PF: > { %s21_s15 = sadd.s32 1, %s1426_s15   ;;  %s1708_s13 = smov %s1422_s14 }
 0x8e4   : > { %p18_p6 = scmp.ge.s32.totalorder %s21_s15, 10   ;;  %s1709_s14 = smov %s1711_s16 }
 0x8e6   :  { %20 = sbr.rel (!%p18_p6) target bundleno = 2 (0x2), region = 108 }

</bundles_post_ra>
